<compile_context>
chip_gen: v5e
topology: v5e:2x2
jax: 0.10.0
libtpu: 0.0.40
codegen_flags: <defaults>
</compile_context>

<pallas_src>
import functools

import jax
import jax.numpy as jnp
from jax.experimental import pallas as pl
from jax.experimental.pallas import tpu as pltpu

INPUT_SIZE = 4
HIDDEN1 = 16
HIDDEN2 = 12
OUTPUT_SIZE = 3

DEFAULT_TILE_B = 32768   # lane-dense batch tile (multiple of 128)
MAX_TILE_B = 65536       # keeps double-buffered blocks under v5e's 16 MiB default


def _round_up(n, m):
    return ((n + m - 1) // m) * m


def _ann_two_hid_kernel(x_ref, w1_ref, b1_ref, w2_ref, b2_ref, w3_ref, b3_ref,
                        out_ref):
    # x_ref: (4, TILE_B) bf16 -- batch lives in the lane (128-wide) dimension,
    # so loads/stores are lane-dense and all math is independent per column.
    x = x_ref[...]

    # h1 = relu(W1 @ x + b1) : (16, TILE_B), f32 accumulation on the MXU.
    h1 = jnp.dot(w1_ref[...], x, preferred_element_type=jnp.float32)
    h1 = jnp.maximum(h1 + b1_ref[...], 0.0).astype(jnp.bfloat16)

    # h2 = relu(W2 @ h1 + b2) : (12, TILE_B)
    h2 = jnp.dot(w2_ref[...], h1, preferred_element_type=jnp.float32)
    h2 = jnp.maximum(h2 + b2_ref[...], 0.0).astype(jnp.bfloat16)

    # out = W3 @ h2 + b3 : (3, TILE_B), kept in f32.
    out = jnp.dot(w3_ref[...], h2, preferred_element_type=jnp.float32)
    out_ref[...] = (out + b3_ref[...]).astype(out_ref.dtype)


def ann_two_hid_t(xt, params, *, tile_b=DEFAULT_TILE_B):
    """Forward pass in the kernel-native features x batch layout.

    xt: (4, B) float array (cast to bf16 for the MXU).  Returns (3, B) f32.
    Callers that already hold activations in this layout pay zero relayout.
    """
    feat, B = xt.shape
    assert feat == INPUT_SIZE

    # Batch tile: multiple of 128, no bigger than needed, capped for VMEM.
    tile = _round_up(max(128, min(tile_b, MAX_TILE_B)), 128)
    tile = min(tile, _round_up(B, 128))
    grid = (pl.cdiv(B, tile),)   # ragged last block is clamped/masked by Pallas

    x_bf16 = xt.astype(jnp.bfloat16)
    w1 = params["w1"].astype(jnp.bfloat16)             # (16, 4)
    w2 = params["w2"].astype(jnp.bfloat16)             # (12, 16)
    w3 = params["w3"].astype(jnp.bfloat16)             # (3, 12)
    b1 = params["b1"].reshape(HIDDEN1, 1).astype(jnp.float32)
    b2 = params["b2"].reshape(HIDDEN2, 1).astype(jnp.float32)
    b3 = params["b3"].reshape(OUTPUT_SIZE, 1).astype(jnp.float32)

    # Streaming specs: x / out tiled along the batch (lane) axis.
    x_spec = pl.BlockSpec((INPUT_SIZE, tile), lambda i: (0, i))
    out_spec = pl.BlockSpec((OUTPUT_SIZE, tile), lambda i: (0, i))
    # Weights/biases: full-shape block, constant index -> fetched once, VMEM-resident.
    resident = lambda arr: pl.BlockSpec(arr.shape, lambda i: (0, 0))

    flops = 2 * B * (INPUT_SIZE * HIDDEN1 + HIDDEN1 * HIDDEN2
                     + HIDDEN2 * OUTPUT_SIZE)
    weight_bytes = (2 * (INPUT_SIZE * HIDDEN1 + HIDDEN1 * HIDDEN2
                         + HIDDEN2 * OUTPUT_SIZE)
                    + 4 * (HIDDEN1 + HIDDEN2 + OUTPUT_SIZE))
    bytes_accessed = B * (2 * INPUT_SIZE + 4 * OUTPUT_SIZE) + weight_bytes

    return pl.pallas_call(
        _ann_two_hid_kernel,
        out_shape=jax.ShapeDtypeStruct((OUTPUT_SIZE, B), jnp.float32),
        grid=grid,
        in_specs=[
            x_spec,
            resident(w1), resident(b1),
            resident(w2), resident(b2),
            resident(w3), resident(b3),
        ],
        out_specs=out_spec,
        compiler_params=pltpu.CompilerParams(
            dimension_semantics=("parallel",),
        ),
        cost_estimate=pl.CostEstimate(
            flops=flops, transcendentals=0, bytes_accessed=bytes_accessed),
    )(x_bf16, w1, b1, w2, b2, w3, b3)


@functools.partial(jax.jit, static_argnames=("tile_b", "small_batch_fallback"))
def ann_two_hid(x, params, *, tile_b=DEFAULT_TILE_B, small_batch_fallback=0):
    """PyTorch-contract forward: x (B, 4) float32 -> (B, 3) float32.

    params in PyTorch nn.Linear layout: w (out_features, in_features),
    b (out_features,).  If B < small_batch_fallback, dispatch to the plain
    fused-XLA path (pallas_call fixed cost not worth it); 0 disables.
    """
    B = x.shape[0]
    if B < small_batch_fallback:
        return ann_two_hid_ref(x, params)
    # Single relayout into the kernel-native layout (fuses with the bf16 cast).
    xt = x.T.astype(jnp.bfloat16)                     # (4, B)
    out_t = ann_two_hid_t(xt, params, tile_b=tile_b)  # (3, B) f32
    return out_t.T                                    # (B, 3)


def init_params(key):
    """Deterministic params in PyTorch nn.Linear layout:
    weight (out_features, in_features), bias (out_features,),
    init U(-1/sqrt(fan_in), 1/sqrt(fan_in)) like torch defaults."""
    ks = jax.random.split(key, 6)

    def uniform_linear(kw, kb, fan_in, fan_out):
        bound = 1.0 / jnp.sqrt(jnp.float32(fan_in))
        w = jax.random.uniform(kw, (fan_out, fan_in), jnp.float32, -bound, bound)
        b = jax.random.uniform(kb, (fan_out,), jnp.float32, -bound, bound)
        return w, b

    w1, b1 = uniform_linear(ks[0], ks[1], INPUT_SIZE, HIDDEN1)
    w2, b2 = uniform_linear(ks[2], ks[3], HIDDEN1, HIDDEN2)
    w3, b3 = uniform_linear(ks[4], ks[5], HIDDEN2, OUTPUT_SIZE)
    return {"w1": w1, "b1": b1, "w2": w2, "b2": b2, "w3": w3, "b3": b3}


def ann_two_hid_ref(x, params):
    """Pure-JAX f32 reference matching the PyTorch forward."""
    h1 = jnp.maximum(x @ params["w1"].T + params["b1"], 0.0)
    h2 = jnp.maximum(h1 @ params["w2"].T + params["b2"], 0.0)
    return h2 @ params["w3"].T + params["b3"]


if __name__ == "__main__":
    key = jax.random.PRNGKey(0)
    kp, kx1, kx2 = jax.random.split(key, 3)
    params = init_params(kp)

    # bf16 matmul operands (per perf review) -> tolerance loosened vs f32 ref.
    TOL = dict(atol=2e-2, rtol=2e-2)

    # Tiny batch: single (partial) 128-lane tile.
    x_small = jax.random.normal(kx1, (8, INPUT_SIZE), jnp.float32)
    out_small = jax.block_until_ready(ann_two_hid(x_small, params))
    ref_small = ann_two_hid_ref(x_small, params)
    assert out_small.shape == (8, OUTPUT_SIZE)
    assert jnp.allclose(out_small, ref_small, **TOL)

    # Ragged batch over several tiles: exercises edge-block clamp/mask with
    # no host-side zero-padding.
    x_rag = jax.random.normal(kx2, (300, INPUT_SIZE), jnp.float32)
    out_rag = jax.block_until_ready(ann_two_hid(x_rag, params, tile_b=128))
    ref_rag = ann_two_hid_ref(x_rag, params)
    assert out_rag.shape == (300, OUTPUT_SIZE)
    assert jnp.allclose(out_rag, ref_rag, **TOL)

    print("KERNEL_OK")
</pallas_src>

<mosaic_0001>
module attributes {stable_mosaic.version = 11 : i64} {
  func.func @_ann_two_hid_kernel(%arg0: i32, %arg1: memref<4x128xbf16, #tpu.memory_space<vmem>>, %arg2: memref<16x4xbf16, #tpu.memory_space<vmem>>, %arg3: memref<16x1xf32, #tpu.memory_space<vmem>>, %arg4: memref<12x16xbf16, #tpu.memory_space<vmem>>, %arg5: memref<12x1xf32, #tpu.memory_space<vmem>>, %arg6: memref<3x12xbf16, #tpu.memory_space<vmem>>, %arg7: memref<3x1xf32, #tpu.memory_space<vmem>>, %arg8: memref<3x128xf32, #tpu.memory_space<vmem>>) attributes {dimension_semantics = [#tpu.dimension_semantics<parallel>], iteration_bounds = array<i64: 1>, scalar_prefetch = 0 : i64, scratch_operands = 0 : i64, tpu.core_type = #tpu.core_type<tc>, window_params = [{transform_indices = @transform_0, window_bounds = array<i64: 4, 128>}, {pipeline_mode = #tpu.pipeline_mode<synchronous>, transform_indices = @transform_1, window_bounds = array<i64: 16, 4>}, {pipeline_mode = #tpu.pipeline_mode<synchronous>, transform_indices = @transform_2, window_bounds = array<i64: 16, 1>}, {pipeline_mode = #tpu.pipeline_mode<synchronous>, transform_indices = @transform_3, window_bounds = array<i64: 12, 16>}, {pipeline_mode = #tpu.pipeline_mode<synchronous>, transform_indices = @transform_4, window_bounds = array<i64: 12, 1>}, {pipeline_mode = #tpu.pipeline_mode<synchronous>, transform_indices = @transform_5, window_bounds = array<i64: 3, 12>}, {pipeline_mode = #tpu.pipeline_mode<synchronous>, transform_indices = @transform_6, window_bounds = array<i64: 3, 1>}, {transform_indices = @transform_7, window_bounds = array<i64: 3, 128>}]} {
    %c0 = arith.constant 0 : index
    %c0_0 = arith.constant 0 : index
    %0 = vector.load %arg1[%c0, %c0_0] : memref<4x128xbf16, #tpu.memory_space<vmem>>, vector<4x128xbf16>
    %c0_1 = arith.constant 0 : index
    %c0_2 = arith.constant 0 : index
    %1 = vector.load %arg2[%c0_1, %c0_2] : memref<16x4xbf16, #tpu.memory_space<vmem>>, vector<16x4xbf16>
    %cst = arith.constant dense<0.000000e+00> : vector<16x128xf32>
    %2 = tpu.matmul %1, %0, %cst {dimension_numbers = #tpu.dot_dimension_numbers<[1], [0], [0], [1], [0, 0, 1, 1], [], []>} : vector<16x4xbf16>, vector<4x128xbf16>, vector<16x128xf32> -> vector<16x128xf32>
    %c0_3 = arith.constant 0 : index
    %c0_4 = arith.constant 0 : index
    %3 = vector.load %arg3[%c0_3, %c0_4] : memref<16x1xf32, #tpu.memory_space<vmem>>, vector<16x1xf32>
    %4 = vector.broadcast %3 : vector<16x1xf32> to vector<16x128xf32>
    %5 = arith.addf %2, %4 : vector<16x128xf32>
    %cst_5 = arith.constant 0.000000e+00 : f32
    %6 = vector.broadcast %cst_5 : f32 to vector<16x128xf32>
    %7 = arith.maximumf %5, %6 : vector<16x128xf32>
    %8 = arith.truncf %7 : vector<16x128xf32> to vector<16x128xbf16>
    %c0_6 = arith.constant 0 : index
    %c0_7 = arith.constant 0 : index
    %9 = vector.load %arg4[%c0_6, %c0_7] : memref<12x16xbf16, #tpu.memory_space<vmem>>, vector<12x16xbf16>
    %cst_8 = arith.constant dense<0.000000e+00> : vector<12x128xf32>
    %10 = tpu.matmul %9, %8, %cst_8 {dimension_numbers = #tpu.dot_dimension_numbers<[1], [0], [0], [1], [0, 0, 1, 1], [], []>} : vector<12x16xbf16>, vector<16x128xbf16>, vector<12x128xf32> -> vector<12x128xf32>
    %c0_9 = arith.constant 0 : index
    %c0_10 = arith.constant 0 : index
    %11 = vector.load %arg5[%c0_9, %c0_10] : memref<12x1xf32, #tpu.memory_space<vmem>>, vector<12x1xf32>
    %12 = vector.broadcast %11 : vector<12x1xf32> to vector<12x128xf32>
    %13 = arith.addf %10, %12 : vector<12x128xf32>
    %cst_11 = arith.constant 0.000000e+00 : f32
    %14 = vector.broadcast %cst_11 : f32 to vector<12x128xf32>
    %15 = arith.maximumf %13, %14 : vector<12x128xf32>
    %16 = arith.truncf %15 : vector<12x128xf32> to vector<12x128xbf16>
    %c0_12 = arith.constant 0 : index
    %c0_13 = arith.constant 0 : index
    %17 = vector.load %arg6[%c0_12, %c0_13] : memref<3x12xbf16, #tpu.memory_space<vmem>>, vector<3x12xbf16>
    %cst_14 = arith.constant dense<0.000000e+00> : vector<3x128xf32>
    %18 = tpu.matmul %17, %16, %cst_14 {dimension_numbers = #tpu.dot_dimension_numbers<[1], [0], [0], [1], [0, 0, 1, 1], [], []>} : vector<3x12xbf16>, vector<12x128xbf16>, vector<3x128xf32> -> vector<3x128xf32>
    %c0_15 = arith.constant 0 : index
    %c0_16 = arith.constant 0 : index
    %19 = vector.load %arg7[%c0_15, %c0_16] : memref<3x1xf32, #tpu.memory_space<vmem>>, vector<3x1xf32>
    %20 = vector.broadcast %19 : vector<3x1xf32> to vector<3x128xf32>
    %21 = arith.addf %18, %20 : vector<3x128xf32>
    %c0_17 = arith.constant 0 : index
    %c0_18 = arith.constant 0 : index
    %22 = vector.load %arg8[%c0_17, %c0_18] : memref<3x128xf32, #tpu.memory_space<vmem>>, vector<3x128xf32>
    tpu.vector_store %arg8[%c0_17, %c0_18], %21 {strides = array<i32>} : memref<3x128xf32, #tpu.memory_space<vmem>>, vector<3x128xf32>,
    return
  }
  func.func @transform_0(%arg0: i32) -> (i32, i32) {
    %c0_i32 = arith.constant 0 : i32
    %c0_i32_0 = arith.constant 0 : i32
    return %c0_i32, %arg0 : i32, i32
  }
  func.func @transform_1(%arg0: i32) -> (i32, i32) {
    %c0_i32 = arith.constant 0 : i32
    %c0_i32_0 = arith.constant 0 : i32
    %c0_i32_1 = arith.constant 0 : i32
    return %c0_i32, %c0_i32_0 : i32, i32
  }
  func.func @transform_2(%arg0: i32) -> (i32, i32) {
    %c0_i32 = arith.constant 0 : i32
    %c0_i32_0 = arith.constant 0 : i32
    %c0_i32_1 = arith.constant 0 : i32
    return %c0_i32, %c0_i32_0 : i32, i32
  }
  func.func @transform_3(%arg0: i32) -> (i32, i32) {
    %c0_i32 = arith.constant 0 : i32
    %c0_i32_0 = arith.constant 0 : i32
    %c0_i32_1 = arith.constant 0 : i32
    return %c0_i32, %c0_i32_0 : i32, i32
  }
  func.func @transform_4(%arg0: i32) -> (i32, i32) {
    %c0_i32 = arith.constant 0 : i32
    %c0_i32_0 = arith.constant 0 : i32
    %c0_i32_1 = arith.constant 0 : i32
    return %c0_i32, %c0_i32_0 : i32, i32
  }
  func.func @transform_5(%arg0: i32) -> (i32, i32) {
    %c0_i32 = arith.constant 0 : i32
    %c0_i32_0 = arith.constant 0 : i32
    %c0_i32_1 = arith.constant 0 : i32
    return %c0_i32, %c0_i32_0 : i32, i32
  }
  func.func @transform_6(%arg0: i32) -> (i32, i32) {
    %c0_i32 = arith.constant 0 : i32
    %c0_i32_0 = arith.constant 0 : i32
    %c0_i32_1 = arith.constant 0 : i32
    return %c0_i32, %c0_i32_0 : i32, i32
  }
  func.func @transform_7(%arg0: i32) -> (i32, i32) {
    %c0_i32 = arith.constant 0 : i32
    %c0_i32_0 = arith.constant 0 : i32
    return %c0_i32, %arg0 : i32, i32
  }
}

</mosaic_0001>

<bundles_post_ra>
// kernel: ann_two_hid.1
= control target key start
LH: loop header
LB: loop body
LE: loop exit
PB: predicated region body
PF: predicated region fallthrough
CT: control target
= control target key end

     0   :  { %vm52_vm0 = vcmask 1041408   ;;  %v202_v3 = vmov 0   ;;  %s277_s0 = inlined_call_operand.vmem [shape: bf16[4,8], index: 0, kind: input, shape index: {}]   ;;  %s278_s1 = inlined_call_operand.vmem [shape: bf16[16,4], index: 1, kind: input, shape index: {}]   ;;  %s279_s2 = inlined_call_operand.vmem [shape: f32[16,1], index: 2, kind: input, shape index: {}]   ;;  %s280_s3 = inlined_call_operand.vmem [shape: bf16[12,16], index: 3, kind: input, shape index: {}]   ;;  %s281_s4 = inlined_call_operand.vmem [shape: f32[12,1], index: 4, kind: input, shape index: {}]   ;;  %s282_s5 = inlined_call_operand.vmem [shape: bf16[3,12], index: 5, kind: input, shape index: {}]   ;;  %s283_s6 = inlined_call_operand.vmem [shape: f32[3,1], index: 6, kind: input, shape index: {}]   ;;  %s284_s7 = inlined_call_operand.hbm [shape: f32[3,8], index: 7, kind: output, shape index: {}]  }
   0x1   :  { %v28_v0 = vld [vmem:[%s277_s0] sm:$0x3]  ;;  %173 = vset.pattern.permute.xlu0 %v202_v3  ;;  %174 = vset.pattern.permute.xlu1 %v202_v3 }
   0x2   :  { %v54_v1 = vsel %vm52_vm0, %v28_v0, 0  ;;  %v169_v2 = vld [vmem:[%s278_s1] sm:$0xff] }
   0x3   :  { %v31_v4 = vld [vmem:[%s279_s2] sm:$0xff] }
   0x4   :  { %12 = vsyncpa [#allocation3], 0  ;;  %63 = vmatpush.bf16.msra.mxu0 %v54_v1  ;;  %vm48_vm1 = vcmask 31744   ;;  %35 = vperm.xlu0 %173, %v31_v4   ;;  %v32_v5 = vld [vmem:[%s279_s2 + $0x8] sm:$0xff]  ;;  %v75_v6 = vld [vmem:[%s281_s4] sm:$0xff]  ;;  %vm92_vm2 = vcmask 130048  }
   0x5   :  { %175 = vset.pattern.permute.xlu2 %v202_v3  ;;  %79 = vperm.xlu1 %174, %v75_v6   ;;  %v76_v7 = vld [vmem:[%s281_s4 + $0x8] sm:$0xf]  ;;  %v165_v16 = vld [vmem:[%s280_s3] sm:$0xf]  ;;  %v170_v17 = vld [vmem:[%s280_s3] sm:$0x30] }
   0x6   :  { %v166_v19 = vor.u32 %v170_v17, %v165_v16  ;;  %v114_v20 = vld [vmem:[%s283_s6] sm:$0x7]  ;;  %vm124_vm3 = vcmask 1045504   ;;  %vm120_vm4 = vcmask 97280   ;;  %s203_s6 = smov [#allocation2]   ;;  %s149_s19 = sshll.u32 %s284_s7, 4  ;;  %s150_s19 = int_to_ptr.hbm [resolvable:$true] %s149_s19 }
   0x7   :  { %162 = vmatmul.msk.bf16.vlgmr.msra.gmra.mxu0 %vm48_vm1, %v169_v2  ;;  %117 = vperm.xlu2 %175, %v114_v20   ;;  %v113_v31 = vld [vmem:[%s282_s5] sm:$0x3]  ;;  %s147_s16 = sshll.u32 %s203_s6, 4  ;;  %s148_s16 = int_to_ptr.vmem [resolvable:$true] %s147_s16 }
   0xc   :  { %40 = vperm.xlu0 %173, %v32_v5  }
   0xd   :  { %84 = vperm.xlu1 %174, %v76_v7  }
  0x61   :  { %v118_v32 = vpop.permute.xlu2 %117 }
  0x76   :  { %v36_v8 = vpop.permute.xlu0 %35 }
  0x77   :  { %v80_v21 = vpop.permute.xlu1 %79 }
  0x7e   :  { %v41_v11 = vpop.permute.xlu0 %40 }
  0x7f   :  { %v85_v24 = vpop.permute.xlu1 %84 }
  0x84   :  { %v65_v9 = vpop.f32.mrf.mxu0 }
  0x85   :  { %v66_v10 = vadd.f32 %v65_v9, %v36_v8 }
  0x87   :  { %v70_v14 = vmax.f32 %v66_v10, 0.0 }
  0x8c   :  { %v67_v12 = vpop.f32.mrf.mxu0 }
  0x8d   :  { %v68_v13 = vadd.f32 %v67_v12, %v41_v11 }
  0x8f   :  { %v71_v15 = vmax.f32 %v68_v13, 0.0 }
  0x91   :  { %v72_v18 = vpack.c.bf16 %v71_v15, %v70_v14 }
  0x93   :  { %103 = vmatpush.bf16.msra.mxu1 %v72_v18 }
  0x96   :  { %167 = vmatmul.msk.bf16.vlgmr.msra.gmra.mxu1 %vm92_vm2, %v166_v19 }
 0x113   :  { %v105_v22 = vpop.f32.mrf.mxu1 }
 0x114   :  { %v106_v23 = vadd.f32 %v105_v22, %v80_v21 }
 0x116   :  { %v110_v27 = vmax.f32 %v106_v23, 0.0 }
 0x11b   :  { %v107_v25 = vpop.f32.mrf.mxu1 }
 0x11c   :  { %v108_v26 = vadd.f32 %v107_v25, %v85_v24 }
 0x11e   :  { %v111_v28 = vmax.f32 %v108_v26, 0.0 }
 0x120   :  { %v112_v29 = vpack.c.bf16 %v111_v28, %v110_v27 }
 0x122   :  { %v126_v30 = vsel %vm124_vm3, %v112_v29, 0 }
 0x123   :  { %135 = vmatpush.bf16.msra.mxu2 %v126_v30 }
 0x126   :  { %168 = vmatmul.msk.bf16.vlgmr.msra.gmra.mxu2 %vm120_vm4, %v113_v31 }
 0x1a9   :  { %v137_v33 = vpop.f32.mrf.mxu2 }
 0x1aa   :  { %v138_v34 = vadd.f32 %v137_v33, %v118_v32 }
 0x1ac   :  { %141 = vst [vmem:[#allocation2] sm:$0x7] %v138_v34 }
 0x1ad   :  { %152 = dma.vmem_to_hbm [thread:$0]  %s148_s16, 64, %s150_s19, [#allocation3]  }
 0x1b1   :  { %v139_v35 = vpop.f32.mrf.mxu2 }
 0x1b2   :  { %200 = dma.done.wait [#allocation3], 64  }
 0x1b3   :  { %201 = vsyncadd [#allocation3], 4294967232 }
 0x1b4   :  { %157 = vsyncpa [#allocation3], 1 }

</bundles_post_ra>
